<compile_context>
chip_gen: v6e
topology: v6e:2x2x1
jax: 0.10.0
libtpu: 0.0.40
codegen_flags: <defaults>
</compile_context>

<pallas_src>
import jax
import jax.numpy as jnp
from jax.experimental import pallas as pl
from jax.experimental.pallas import tpu as pltpu


# ----------------------------- in-kernel helpers ---------------------------- #

def _erf(x):
    # A&S 7.1.26 polynomial; abs/where/mul/add/exp only (exp -> EUP slot).
    a1, a2, a3, a4, a5 = (0.254829592, -0.284496736, 1.421413741,
                          -1.453152027, 1.061405429)
    p = 0.3275911
    z = jnp.abs(x)
    t = 1.0 / (1.0 + p * z)
    poly = ((((a5 * t + a4) * t + a3) * t + a2) * t + a1) * t
    y = 1.0 - poly * jnp.exp(-z * z)
    return jnp.where(x >= 0.0, y, -y)


def _gelu_exact(x):
    return 0.5 * x * (1.0 + _erf(x * 0.7071067811865476))


# ------------------------------- fused kernel ------------------------------- #

def _ffn_kernel(x_ref, w1_ref, b1_ref, w2_ref, b2_ref, o_ref):
    H = w2_ref.shape[0]                                   # static hidden width

    x = x_ref[...].astype(jnp.float32)                    # (tm, D)

    # First Linear: one wide (D, 2H) matmul, f32 accumulation on the MXU.
    h = jnp.dot(x, w1_ref[...].astype(jnp.float32),
                preferred_element_type=jnp.float32)
    h = h + b1_ref[...].astype(jnp.float32)               # (tm, 2H)

    # GEGLU: value * gelu(gate) — static lane-slice at a 128-multiple boundary.
    v = h[:, :H]
    g = h[:, H:]
    a = v * _gelu_exact(g)                                # (tm, H)
    # TODO(synk): nn.Dropout between GEGLU and the second Linear is identity in
    # eval / p=0.0 mode and is not implemented here.

    out = jnp.dot(a, w2_ref[...].astype(jnp.float32),
                  preferred_element_type=jnp.float32)
    out = out + b2_ref[...].astype(jnp.float32)           # (tm, D)
    o_ref[...] = out.astype(o_ref.dtype)


# ------------------------------ module forward ------------------------------ #

def feedforward_forward(x, w1, b1, w2, b2, *, block_m=256):
    """FeedForward.forward.  x: (B, N, D).  PyTorch nn.Linear weights are (out, in)."""
    B, N, D = x.shape
    two_h, d_in = w1.shape
    H = two_h // 2
    assert d_in == D and w2.shape == (D, H)
    assert b1.shape == (two_h,) and b2.shape == (D,)

    # Pre-transpose at trace time so every in-kernel operand is a plain
    # lane-dense (in, out) matmul weight.
    w1t = w1.T                    # (D, 2H)
    b1r = b1.reshape(1, two_h)
    w2t = w2.T                    # (H, D)
    b2r = b2.reshape(1, D)

    M = B * N
    x2d = x.reshape(M, D)

    # Row tile over the flattened token axis: whole problem in one grid step
    # when small, otherwise block_m-row tiles (pad so the grid divides evenly).
    tm = M if M <= block_m else block_m
    m_pad = pl.cdiv(M, tm) * tm
    if m_pad != M:
        x2d = jnp.pad(x2d, ((0, m_pad - M), (0, 0)))

    row_spec = pl.BlockSpec((tm, D), lambda i: (i, 0))
    full = lambda i: (0, 0)       # weights/biases: same block every step -> VMEM-resident

    out2d = pl.pallas_call(
        _ffn_kernel,
        out_shape=jax.ShapeDtypeStruct((m_pad, D), x.dtype),
        grid=(m_pad // tm,),
        in_specs=[
            row_spec,                            # x rows
            pl.BlockSpec((D, two_h), full),      # w1 (D, 2H)
            pl.BlockSpec((1, two_h), full),      # b1
            pl.BlockSpec((H, D), full),          # w2
            pl.BlockSpec((1, D), full),          # b2
        ],
        out_specs=row_spec,
        compiler_params=pltpu.CompilerParams(
            dimension_semantics=("parallel",)),
    )(x2d, w1t, b1r, w2t, b2r)

    return out2d[:M].reshape(B, N, D)


# ---------------------------- pure-JAX reference ---------------------------- #

def feedforward_reference(x, w1, b1, w2, b2):
    h = x @ w1.T + b1
    v, g = jnp.split(h, 2, axis=-1)
    a = v * jax.nn.gelu(g, approximate=False)    # torch F.gelu default (exact erf)
    return a @ w2.T + b2


# ----------------------------------- main ----------------------------------- #

if __name__ == "__main__":
    key = jax.random.PRNGKey(0)
    B, N, dim, mult = 2, 8, 32, 4
    H = dim * mult                # 128 (lane-dense hidden width)

    k1, k2, k3, k4, k5 = jax.random.split(key, 5)
    x = jax.random.normal(k1, (B, N, dim), jnp.float32)
    # PyTorch nn.Linear stores W as (out, in).
    w1 = jax.random.normal(k2, (2 * H, dim), jnp.float32) * 0.05
    b1 = jax.random.normal(k3, (2 * H,), jnp.float32) * 0.05
    w2 = jax.random.normal(k4, (dim, H), jnp.float32) * 0.05
    b2 = jax.random.normal(k5, (dim,), jnp.float32) * 0.05

    out = feedforward_forward(x, w1, b1, w2, b2)
    out = jax.block_until_ready(out)

    ref = feedforward_reference(x, w1, b1, w2, b2)
    assert out.shape == (B, N, dim)
    assert jnp.allclose(out, ref, atol=1e-4, rtol=1e-4), \
        float(jnp.max(jnp.abs(out - ref)))

    print("KERNEL_OK")
</pallas_src>

<mosaic_0001>
module attributes {stable_mosaic.version = 11 : i64} {
  func.func @_ffn_kernel(%arg0: i32, %arg1: memref<16x32xf32, #tpu.memory_space<vmem>>, %arg2: memref<32x256xf32, #tpu.memory_space<vmem>>, %arg3: memref<1x256xf32, #tpu.memory_space<vmem>>, %arg4: memref<128x32xf32, #tpu.memory_space<vmem>>, %arg5: memref<1x32xf32, #tpu.memory_space<vmem>>, %arg6: memref<16x32xf32, #tpu.memory_space<vmem>>) attributes {dimension_semantics = [#tpu.dimension_semantics<parallel>], iteration_bounds = array<i64: 1>, scalar_prefetch = 0 : i64, scratch_operands = 0 : i64, tpu.core_type = #tpu.core_type<tc>, window_params = [{transform_indices = @transform_0, window_bounds = array<i64: 16, 32>}, {pipeline_mode = #tpu.pipeline_mode<synchronous>, transform_indices = @transform_1, window_bounds = array<i64: 32, 256>}, {pipeline_mode = #tpu.pipeline_mode<synchronous>, transform_indices = @transform_2, window_bounds = array<i64: 1, 256>}, {pipeline_mode = #tpu.pipeline_mode<synchronous>, transform_indices = @transform_3, window_bounds = array<i64: 128, 32>}, {pipeline_mode = #tpu.pipeline_mode<synchronous>, transform_indices = @transform_4, window_bounds = array<i64: 1, 32>}, {transform_indices = @transform_5, window_bounds = array<i64: 16, 32>}]} {
    %c0 = arith.constant 0 : index
    %c0_0 = arith.constant 0 : index
    %0 = vector.load %arg1[%c0, %c0_0] : memref<16x32xf32, #tpu.memory_space<vmem>>, vector<16x32xf32>
    %c0_1 = arith.constant 0 : index
    %c0_2 = arith.constant 0 : index
    %1 = vector.load %arg2[%c0_1, %c0_2] : memref<32x256xf32, #tpu.memory_space<vmem>>, vector<32x256xf32>
    %cst = arith.constant dense<0.000000e+00> : vector<16x256xf32>
    %2 = tpu.matmul %0, %1, %cst {dimension_numbers = #tpu.dot_dimension_numbers<[1], [0], [0], [1], [0, 0, 1, 1], [], []>} : vector<16x32xf32>, vector<32x256xf32>, vector<16x256xf32> -> vector<16x256xf32>
    %c0_3 = arith.constant 0 : index
    %c0_4 = arith.constant 0 : index
    %3 = vector.load %arg3[%c0_3, %c0_4] : memref<1x256xf32, #tpu.memory_space<vmem>>, vector<1x256xf32>
    %4 = vector.broadcast %3 : vector<1x256xf32> to vector<16x256xf32>
    %5 = arith.addf %2, %4 : vector<16x256xf32>
    %6 = vector.extract_strided_slice %5 {offsets = [0, 0], sizes = [16, 128], strides = [1, 1]} : vector<16x256xf32> to vector<16x128xf32>
    %7 = vector.extract_strided_slice %5 {offsets = [0, 128], sizes = [16, 128], strides = [1, 1]} : vector<16x256xf32> to vector<16x128xf32>
    %cst_5 = arith.constant 5.000000e-01 : f32
    %8 = vector.broadcast %cst_5 : f32 to vector<16x128xf32>
    %9 = arith.mulf %8, %7 : vector<16x128xf32>
    %cst_6 = arith.constant 0.707106769 : f32
    %10 = vector.broadcast %cst_6 : f32 to vector<16x128xf32>
    %11 = arith.mulf %7, %10 : vector<16x128xf32>
    %12 = math.absf %11 : vector<16x128xf32>
    %cst_7 = arith.constant 0.327591091 : f32
    %13 = vector.broadcast %cst_7 : f32 to vector<16x128xf32>
    %14 = arith.mulf %13, %12 : vector<16x128xf32>
    %cst_8 = arith.constant 1.000000e+00 : f32
    %15 = vector.broadcast %cst_8 : f32 to vector<16x128xf32>
    %16 = arith.addf %15, %14 : vector<16x128xf32>
    %cst_9 = arith.constant 1.000000e+00 : f32
    %17 = vector.broadcast %cst_9 : f32 to vector<16x128xf32>
    %18 = arith.divf %17, %16 : vector<16x128xf32>
    %cst_10 = arith.constant 1.06140542 : f32
    %19 = vector.broadcast %cst_10 : f32 to vector<16x128xf32>
    %20 = arith.mulf %19, %18 : vector<16x128xf32>
    %cst_11 = arith.constant -1.45315206 : f32
    %21 = vector.broadcast %cst_11 : f32 to vector<16x128xf32>
    %22 = arith.addf %20, %21 : vector<16x128xf32>
    %23 = arith.mulf %22, %18 : vector<16x128xf32>
    %cst_12 = arith.constant 1.42141378 : f32
    %24 = vector.broadcast %cst_12 : f32 to vector<16x128xf32>
    %25 = arith.addf %23, %24 : vector<16x128xf32>
    %26 = arith.mulf %25, %18 : vector<16x128xf32>
    %cst_13 = arith.constant -0.284496725 : f32
    %27 = vector.broadcast %cst_13 : f32 to vector<16x128xf32>
    %28 = arith.addf %26, %27 : vector<16x128xf32>
    %29 = arith.mulf %28, %18 : vector<16x128xf32>
    %cst_14 = arith.constant 0.254829586 : f32
    %30 = vector.broadcast %cst_14 : f32 to vector<16x128xf32>
    %31 = arith.addf %29, %30 : vector<16x128xf32>
    %32 = arith.mulf %31, %18 : vector<16x128xf32>
    %cst_15 = arith.constant 0.000000e+00 : f32
    %33 = vector.broadcast %cst_15 : f32 to vector<16x128xf32>
    %34 = arith.subf %33, %12 : vector<16x128xf32>
    %35 = arith.mulf %34, %12 : vector<16x128xf32>
    %36 = math.exp %35 : vector<16x128xf32>
    %37 = arith.mulf %32, %36 : vector<16x128xf32>
    %cst_16 = arith.constant 1.000000e+00 : f32
    %38 = vector.broadcast %cst_16 : f32 to vector<16x128xf32>
    %39 = arith.subf %38, %37 : vector<16x128xf32>
    %cst_17 = arith.constant 0.000000e+00 : f32
    %40 = vector.broadcast %cst_17 : f32 to vector<16x128xf32>
    %41 = arith.cmpf oge, %11, %40 : vector<16x128xf32>
    %cst_18 = arith.constant 0.000000e+00 : f32
    %42 = vector.broadcast %cst_18 : f32 to vector<16x128xf32>
    %43 = arith.subf %42, %39 : vector<16x128xf32>
    %44 = arith.select %41, %39, %43 : vector<16x128xi1>, vector<16x128xf32>
    %cst_19 = arith.constant 1.000000e+00 : f32
    %45 = vector.broadcast %cst_19 : f32 to vector<16x128xf32>
    %46 = arith.addf %45, %44 : vector<16x128xf32>
    %47 = arith.mulf %9, %46 : vector<16x128xf32>
    %48 = arith.mulf %6, %47 : vector<16x128xf32>
    %c0_20 = arith.constant 0 : index
    %c0_21 = arith.constant 0 : index
    %49 = vector.load %arg4[%c0_20, %c0_21] : memref<128x32xf32, #tpu.memory_space<vmem>>, vector<128x32xf32>
    %cst_22 = arith.constant dense<0.000000e+00> : vector<16x32xf32>
    %50 = tpu.matmul %48, %49, %cst_22 {dimension_numbers = #tpu.dot_dimension_numbers<[1], [0], [0], [1], [0, 0, 1, 1], [], []>} : vector<16x128xf32>, vector<128x32xf32>, vector<16x32xf32> -> vector<16x32xf32>
    %c0_23 = arith.constant 0 : index
    %c0_24 = arith.constant 0 : index
    %51 = vector.load %arg5[%c0_23, %c0_24] : memref<1x32xf32, #tpu.memory_space<vmem>>, vector<1x32xf32>
    %52 = vector.broadcast %51 : vector<1x32xf32> to vector<16x32xf32>
    %53 = arith.addf %50, %52 : vector<16x32xf32>
    %c0_25 = arith.constant 0 : index
    %c0_26 = arith.constant 0 : index
    %54 = vector.load %arg6[%c0_25, %c0_26] : memref<16x32xf32, #tpu.memory_space<vmem>>, vector<16x32xf32>
    tpu.vector_store %arg6[%c0_25, %c0_26], %53 {strides = array<i32>} : memref<16x32xf32, #tpu.memory_space<vmem>>, vector<16x32xf32>,
    return
  }
  func.func @transform_0(%arg0: i32) -> (i32, i32) {
    %c0_i32 = arith.constant 0 : i32
    %c0_i32_0 = arith.constant 0 : i32
    return %arg0, %c0_i32 : i32, i32
  }
  func.func @transform_1(%arg0: i32) -> (i32, i32) {
    %c0_i32 = arith.constant 0 : i32
    %c0_i32_0 = arith.constant 0 : i32
    %c0_i32_1 = arith.constant 0 : i32
    return %c0_i32, %c0_i32_0 : i32, i32
  }
  func.func @transform_2(%arg0: i32) -> (i32, i32) {
    %c0_i32 = arith.constant 0 : i32
    %c0_i32_0 = arith.constant 0 : i32
    %c0_i32_1 = arith.constant 0 : i32
    return %c0_i32, %c0_i32_0 : i32, i32
  }
  func.func @transform_3(%arg0: i32) -> (i32, i32) {
    %c0_i32 = arith.constant 0 : i32
    %c0_i32_0 = arith.constant 0 : i32
    %c0_i32_1 = arith.constant 0 : i32
    return %c0_i32, %c0_i32_0 : i32, i32
  }
  func.func @transform_4(%arg0: i32) -> (i32, i32) {
    %c0_i32 = arith.constant 0 : i32
    %c0_i32_0 = arith.constant 0 : i32
    %c0_i32_1 = arith.constant 0 : i32
    return %c0_i32, %c0_i32_0 : i32, i32
  }
  func.func @transform_5(%arg0: i32) -> (i32, i32) {
    %c0_i32 = arith.constant 0 : i32
    %c0_i32_0 = arith.constant 0 : i32
    return %arg0, %c0_i32 : i32, i32
  }
}

</mosaic_0001>

<bundles_post_ra>
// kernel: tpu_custom_call.1
= control target key start
LH: loop header
LB: loop body
LE: loop exit
PB: predicated region body
PF: predicated region fallthrough
CT: control target
= control target key end

     0   :  { %v389_v4 = vmov 0.0   ;;  %s514_s0 = inlined_call_operand.vmem [shape: f32[16,32], index: 0, kind: input, shape index: {}]   ;;  %s515_s1 = inlined_call_operand.vmem [shape: f32[32,256], index: 1, kind: input, shape index: {}]   ;;  %s516_s2 = inlined_call_operand.vmem [shape: f32[1,256], index: 2, kind: input, shape index: {}]   ;;  %s517_s3 = inlined_call_operand.vmem [shape: f32[128,32], index: 3, kind: input, shape index: {}]   ;;  %s518_s4 = inlined_call_operand.vmem [shape: f32[1,32], index: 4, kind: input, shape index: {}]   ;;  %s519_s5 = inlined_call_operand.hbm [shape: f32[16,32], index: 5, kind: output, shape index: {}]  }
   0x1   :  { %v30_v0 = vld [vmem:[%s515_s1 + $0x38] sm:$0xff]  ;;  %v29_v1 = vld [vmem:[%s515_s1 + $0x30] sm:$0xff]  ;;  %v28_v2 = vld [vmem:[%s515_s1 + $0x28] sm:$0xff]  ;;  %114 = vmatprep.mubr.f32.mxu0 %v389_v4 }
   0x2   :  { %74 = vmatprep.subr.mxu0 %v30_v0  ;;  %v27_v3 = vld [vmem:[%s515_s1 + $0x20] sm:$0xff]  ;;  %v26_v5 = vld [vmem:[%s515_s1 + $0x18] sm:$0xff]  ;;  %v25_v6 = vld [vmem:[%s515_s1 + $0x10] sm:$0xff] }
   0x3   :  { %75 = vmatpush1.msra.mxu0 %v29_v1 }
   0x4   :  { %76 = vmatprep.subr.mxu0 %v28_v2 }
   0x5   :  { %10 = vsyncpa [#allocation3], 0  ;;  %77 = vmatpush1.msra.mxu0 %v27_v3  ;;  %v24_v7 = vld [vmem:[%s515_s1 + $0x8] sm:$0xff]  ;;  %v23_v8 = vld [vmem:[%s515_s1] sm:$0xff]  ;;  %vm43_vm0 = vcmask 261120   ;;  %v33_v27 = vlaneseq  ;;  %s390_s18 = smov [#allocation2]  }
   0x6   :  { %78 = vmatprep.subr.mxu0 %v26_v5  ;;  %v21_v9 = vld [vmem:[%s514_s0] sm:$0xff]  ;;  %v22_v10 = vld [vmem:[%s514_s0 + $0x8] sm:$0xff]  ;;  %v198_v11 = vld [vmem:[%s517_s3 + $0x78] sm:$0xff]  ;;  %s288_s19 = sshll.u32 %s390_s18, 4  ;;  %s289_s19 = int_to_ptr.vmem [resolvable:$true] %s288_s19 }
   0x7   :  { %79 = vmatpush1.msra.mxu0 %v25_v6  ;;  %320 = vmatprep.subr.mxu1 %v198_v11  ;;  %v197_v12 = vld [vmem:[%s517_s3 + $0x70] sm:$0xff]  ;;  %v196_v13 = vld [vmem:[%s517_s3 + $0x68] sm:$0xff]  ;;  %v195_v14 = vld [vmem:[%s517_s3 + $0x60] sm:$0xff]  ;;  %v34_v28 = vshrl.u32 %v33_v27, 7  ;;  %s367_s20 = scalar_lea.vmem %s289_s19, 256  ;;  %p372_p1 = scmp.lt.s32.totalorder %s289_s19, %s289_s19 }
   0x8   :  { %80 = vmatprep.subr.mxu0 %v24_v7  ;;  %321 = vmatpush3.msra.mxu1 %v198_v11  ;;  %v194_v15 = vld [vmem:[%s517_s3 + $0x58] sm:$0xff]  ;;  %v193_v16 = vld [vmem:[%s517_s3 + $0x50] sm:$0xff]  ;;  %v192_v17 = vld [vmem:[%s517_s3 + $0x48] sm:$0xff]  ;;  %p368_p0 = scmp.ne.s32.totalorder %s289_s19, %s367_s20  ;;  %p373_p2 = scmp.lt.s32.totalorder %s367_s20, %s367_s20 }
   0x9   :  { %81 = vmatpush1.msra.mxu0 %v23_v8  ;;  %322 = vmatprep.subr.mxu1 %v197_v12  ;;  %v191_v18 = vld [vmem:[%s517_s3 + $0x40] sm:$0xff]  ;;  %v190_v19 = vld [vmem:[%s517_s3 + $0x38] sm:$0xff]  ;;  %v189_v20 = vld [vmem:[%s517_s3 + $0x30] sm:$0xff]  ;;  %v39_v29 = vsub.s32 1, %v34_v28 }
   0xa   :  { %299 = vmatmul.mubr.msk.f32.vlgmr.msra.gmra.mxu0 %vm43_vm0, %v21_v9  ;;  %323 = vmatpush3.msra.mxu1 %v197_v12  ;;  %v188_v21 = vld [vmem:[%s517_s3 + $0x28] sm:$0xff]  ;;  %v187_v22 = vld [vmem:[%s517_s3 + $0x20] sm:$0xff]  ;;  %v186_v23 = vld [vmem:[%s517_s3 + $0x18] sm:$0xff]  ;;  %v35_v9 = vsub.s32 0, %v34_v28  ;;  %p374_p3 = por %p373_p2, %p372_p1 }
   0xb   :  { %120 = vmatprep.mubr.f32.mxu0 %v389_v4  ;;  %324 = vmatprep.subr.mxu1 %v196_v13  ;;  %v185_v24 = vld [vmem:[%s517_s3 + $0x10] sm:$0xff]  ;;  %v184_v25 = vld [vmem:[%s517_s3 + $0x8] sm:$0xff]  ;;  %v183_v26 = vld [vmem:[%s517_s3] sm:$0xff] }
   0xc   :  { %325 = vmatpush3.msra.mxu1 %v196_v13  ;;  %v31_v30 = vld [vmem:[%s516_s2] sm:$0x3]  ;;  %p375_p4 = pnand %p374_p3, %p368_p0 }
   0xd   :  { %326 = vmatprep.subr.mxu1 %v195_v14  ;;  %v40_v31 = vrot.slane %v31_v30, %v39_v29 }
   0xe   :  { %300 = vmatmul.mubr.msk.f32.gmra.mxu0 %vm43_vm0, %v22_v10  ;;  %327 = vmatpush3.msra.mxu1 %v195_v14 }
   0xf   :  { %328 = vmatprep.subr.mxu1 %v194_v15 }
  0x10   :  { %329 = vmatpush3.msra.mxu1 %v194_v15  ;;  %v36_v15 = vrot.slane %v31_v30, %v35_v9  ;;  %v301_v30 = vld [vmem:[%s518_s4] ss:$0 sm:$0xff] }
  0x11   :  { %330 = vmatprep.subr.mxu1 %v193_v16 }
  0x12   :  { %331 = vmatpush3.msra.mxu1 %v193_v16 }
  0x13   :  { %332 = vmatprep.subr.mxu1 %v192_v17 }
  0x14   :  { %333 = vmatpush3.msra.mxu1 %v192_v17 }
  0x15   :  { %334 = vmatprep.subr.mxu1 %v191_v18 }
  0x16   :  { %335 = vmatpush3.msra.mxu1 %v191_v18 }
  0x17   :  { %336 = vmatprep.subr.mxu1 %v190_v19 }
  0x18   :  { %337 = vmatpush3.msra.mxu1 %v190_v19 }
  0x19   :  { %338 = vmatprep.subr.mxu1 %v189_v20 }
  0x1a   :  { %339 = vmatpush3.msra.mxu1 %v189_v20 }
  0x1b   :  { %340 = vmatprep.subr.mxu1 %v188_v21 }
  0x1c   :  { %341 = vmatpush3.msra.mxu1 %v188_v21 }
  0x1d   :  { %342 = vmatprep.subr.mxu1 %v187_v22 }
  0x1e   :  { %343 = vmatpush3.msra.mxu1 %v187_v22 }
  0x1f   :  { %344 = vmatprep.subr.mxu1 %v186_v23 }
  0x20   :  { %345 = vmatpush3.msra.mxu1 %v186_v23 }
  0x21   :  { %346 = vmatprep.subr.mxu1 %v185_v24 }
  0x22   :  { %347 = vmatpush3.msra.mxu1 %v185_v24 }
  0x23   :  { %348 = vmatprep.subr.mxu1 %v184_v25 }
  0x24   :  { %349 = vmatpush3.msra.mxu1 %v184_v25 }
  0x25   :  { %350 = vmatprep.subr.mxu1 %v183_v26 }
  0x26   :  { %351 = vmatpush3.msra.mxu1 %v183_v26 }
  0xca   :  { %v116_v32 = vpop.f32.mrf.mxu0 }
  0xcb   :  { %v117_v21 = vadd.f32 %v116_v32, %v36_v15 }
  0xcc   :  { %v118_v33 = vpop.f32.mrf.mxu0 }
  0xcd   :  { %v119_v34 = vadd.f32 %v118_v33, %v40_v31 }
  0xce   :  { %v122_v35 = vpop.f32.mrf.mxu0 }
  0xcf   :  { %v129_v36 = vmul.f32 0.70710677, %v119_v34  ;;  %v127_v18 = vmul.f32 0.5, %v119_v34  ;;  %v123_v27 = vadd.f32 %v122_v35, %v36_v15 }
  0xd0   :  { %v124_v37 = vpop.f32.mrf.mxu0 }
  0xd1   :  { %v131_v38 = vand.u32 2147483647, %v129_v36  ;;  %v125_v39 = vadd.f32 %v124_v37, %v40_v31  ;;  %vm171_vm1 = vcmp.ge.f32.partialorder %v129_v36, 0.0 }
  0xd3   :  { %v133_v40 = vmul.f32 0.3275911, %v131_v38  ;;  %v130_v41 = vmul.f32 0.70710677, %v125_v39  ;;  %v159_v46 = vsub.f32 0.0, %v131_v38  ;;  %v128_v24 = vmul.f32 0.5, %v125_v39 }
  0xd5   :  { %v135_v42 = vadd.f32 1.0, %v133_v40  ;;  %v132_v43 = vand.u32 2147483647, %v130_v41  ;;  %v161_v47 = vmul.f32 %v159_v46, %v131_v38  ;;  %vm172_vm2 = vcmp.ge.f32.partialorder %v130_v41, 0.0 }
  0xd7   :  { %359 = vrcp.f32 %v135_v42  ;;  %v134_v44 = vmul.f32 0.3275911, %v132_v43  ;;  %v160_v48 = vsub.f32 0.0, %v132_v43  ;;  %v163_v50 = vmul.f32 1.442695, %v161_v47 }
  0xd9   :  { %v136_v45 = vadd.f32 1.0, %v134_v44  ;;  %v162_v51 = vmul.f32 %v160_v48, %v132_v43 }
  0xdb   :  { %361 = vrcp.f32 %v136_v45  ;;  %v165_v56 = vmul.f32 1.442695, %v162_v51 }
  0xdc   :  { %363 = vpow2.f32 %v163_v50 }
  0xdd   :  { %365 = vpow2.f32 %v165_v56 }
  0xe4   :  { %v360_v49 = vpop.eup %359 }
  0xe5   :  { %v141_v52 = vmul.f32 1.0614054, %v360_v49 }
  0xe7   :  { %v143_v53 = vadd.f32 -1.4531521, %v141_v52 }
  0xe8   :  { %v362_v54 = vpop.eup %361 }
  0xe9   :  { %v142_v55 = vmul.f32 1.0614054, %v362_v54  ;;  %v145_v57 = vmul.f32 %v360_v49, %v143_v53  ;;  %v364_v6 = vpop.eup %363 }
  0xea   :  { %v366_v12 = vpop.eup %365 }
  0xeb   :  { %v144_v58 = vadd.f32 -1.4531521, %v142_v55  ;;  %v147_v59 = vadd.f32 1.4214138, %v145_v57 }
  0xed   :  { %v146_v60 = vmul.f32 %v362_v54, %v144_v58  ;;  %v149_v61 = vmul.f32 %v360_v49, %v147_v59 }
  0xef   :  { %v148_v62 = vadd.f32 1.4214138, %v146_v60  ;;  %v151_v63 = vadd.f32 -0.28449672, %v149_v61 }
  0xf1   :  { %v150_v0 = vmul.f32 %v362_v54, %v148_v62  ;;  %v153_v1 = vmul.f32 %v360_v49, %v151_v63 }
  0xf3   :  { %v152_v2 = vadd.f32 -0.28449672, %v150_v0  ;;  %v155_v3 = vadd.f32 0.2548296, %v153_v1 }
  0xf5   :  { %v154_v4 = vmul.f32 %v362_v54, %v152_v2  ;;  %v157_v5 = vmul.f32 %v360_v49, %v155_v3 }
  0xf7   :  { %v156_v7 = vadd.f32 0.2548296, %v154_v4  ;;  %v167_v8 = vmul.f32 %v364_v6, %v157_v5 }
  0xf9   :  { %v158_v10 = vmul.f32 %v362_v54, %v156_v7  ;;  %v169_v11 = vsub.f32 1.0, %v167_v8 }
  0xfb   :  { %v168_v13 = vmul.f32 %v366_v12, %v158_v10  ;;  %v173_v14 = vsub.f32 0.0, %v169_v11 }
  0xfd   :  { %v170_v16 = vsub.f32 1.0, %v168_v13  ;;  %v175_v17 = vsel %vm171_vm1, %v169_v11, %v173_v14 }
  0xfe   :  { %v177_v19 = vadd.f32 1.0, %v175_v17 }
  0xff   :  { %v174_v20 = vsub.f32 0.0, %v170_v16 }
 0x100   :  { %v179_v22 = vmul.f32 %v177_v19, %v127_v18 }
 0x101   :  { %v176_v23 = vsel %vm172_vm2, %v170_v16, %v174_v20 }
 0x102   :  { %v178_v25 = vadd.f32 1.0, %v176_v23  ;;  %v181_v26 = vmul.f32 %v179_v22, %v117_v21 }
 0x104   :  { %v180_v28 = vmul.f32 %v178_v25, %v128_v24  ;;  %352 = vmatprep.mubr.f32.mxu1 %v181_v26 }
 0x106   :  { %v182_v29 = vmul.f32 %v180_v28, %v123_v27 }
 0x108   :  { %353 = vmatmul.mubr.f32.vlgmr.msra.gmra.mxu1 %v182_v29 }
 0x1c8   :  { %v354_v31 = vpop.f32.mrf.mxu1 }
 0x1c9   :  { %v278_v33 = vadd.f32 %v354_v31, %v301_v30 }
 0x1ca   :  { %v272_v32 = vpop.f32.mrf.mxu1 }
 0x1cb   :  { %282 = vst.msk [vmem:[#allocation2 + $0x8] sm:$0xff] %vm43_vm0, %v278_v33  ;;  %v273_v34 = vadd.f32 %v301_v30, %v272_v32 }
 0x1cd   :  { %281 = vst.msk [vmem:[#allocation2] sm:$0xff] %vm43_vm0, %v273_v34 }
 0x1ce   :  { %378 = shalt.err (!%p375_p4)
}
 0x1cf   :  { %s391_s21 = smov 128   ;;  %s392_s4 = smov 8  }
 0x1d0   :  { %294 = dma.vmem_to_hbm [thread:$0]  %s289_s19, 256, %s519_s5, [#allocation3], %s391_s21, %s391_s21, %s392_s4  }
 0x1d1   :  { %387 = dma.done.wait [#allocation3], 256  }
 0x1d2   :  { %388 = vsyncadd [#allocation3], 4294967040 }
 0x1d3   :  { %298 = vsyncpa [#allocation3], 1 }

</bundles_post_ra>
